<compile_context>
chip_gen: v6e
topology: v6e:2x2x1
jax: 0.10.0
libtpu: 0.0.40
codegen_flags: <defaults>
</compile_context>

<pallas_src>
import jax
import jax.numpy as jnp
from jax.experimental import pallas as pl
from jax.experimental.pallas import tpu as pltpu


def film_kernel(feats_ref, gb_ref, out_ref):
    # feats_ref/out_ref: [TR, TS] tile of the flattened [B*C, H*W] feature map.
    # gb_ref: [TR, 2] per-row (gamma | beta) in f32, broadcast over the lane axis.
    # Pure streaming VPU multiply-add; cast back for narrow output dtypes.
    gb = gb_ref[...]
    gamma = gb[:, 0:1]
    beta = gb[:, 1:2]
    out_ref[...] = (feats_ref[...] * gamma + beta).astype(out_ref.dtype)


def _round_up(x, m):
    return ((x + m - 1) // m) * m


def _round_down(x, m):
    return (x // m) * m


def _device_budget():
    """Per-generation (per_buffer_bytes, vmem_limit_bytes, tensorcores_per_chip)."""
    try:
        kind = jax.devices()[0].device_kind.lower()
    except Exception:
        kind = ""
    if "v7" in kind:
        # ~3.2 TB/s HBM: amortize the ~0.35 us/step overhead with ~8 MiB buffers.
        # 2x in + 2x out double buffers ~= 32 MiB, so raise the 32 MiB scoped
        # default (64 MiB physical per TC).
        return 8 << 20, 48 << 20, 2
    if "v6" in kind:
        return 4 << 20, None, 1      # ~16 MiB live of the 32 MiB scoped default
    # v5e / unknown: conservative -- 2 MiB/buffer = 8 MiB live of the 16 MiB default.
    return 2 << 20, None, 1


def film_forward(feats, inp, w, b, feature_size, *, row_tile=None, spatial_tile=None):
    """feats: [B, C, H, W] (C == feature_size), inp: [B, D],
    w: [D, 2*F], b: [2*F]  (Linear applied as inp @ w + b)."""
    B, C, H, W = feats.shape
    F = feature_size
    assert C == F, "FiLM expects feats channel dim == feature_size"
    HW = H * W
    R = B * C
    itemsize = jnp.dtype(feats.dtype).itemsize

    # gamma / beta: tiny linear hoisted out of the memory-bound streaming kernel,
    # fused into a single [R, 2] side input (col 0 = gamma, col 1 = beta).
    gb = jnp.dot(inp, w, preferred_element_type=jnp.float32) + b.astype(jnp.float32)
    gb2 = jnp.concatenate(
        [gb[:, :F].reshape(R, 1), gb[:, F:].reshape(R, 1)], axis=1)   # [R, 2] f32

    # Flatten so sublanes = B*C rows and the spatial axis sits lane-dense.
    feats2 = feats.reshape(R, HW)

    per_buf, vmem_limit, n_cores = _device_budget()
    # Dtype-aware sublane alignment: 8 rows f32, 16 bf16, 32 int8/fp8.
    row_align = 8 * max(1, 4 // itemsize)
    row_target = 512 if per_buf >= (8 << 20) else 256   # multiples of every row_align

    if row_tile is None:
        row_tile = R if R <= row_target else row_target
    if spatial_tile is None:
        lane_budget = max(128, _round_down(per_buf // (row_tile * itemsize), 128))
        spatial_tile = HW if HW <= 128 else min(_round_up(HW, 128), lane_budget)

    # Block-shape legality: last two dims must be (8,128)-aligned or full-extent.
    assert row_tile == R or row_tile % 8 == 0, \
        "row_tile must be a multiple of 8 or equal to B*C"
    assert spatial_tile == HW or spatial_tile % 128 == 0, \
        "spatial_tile must be a multiple of 128 or equal to H*W"

    grid_r = pl.cdiv(R, row_tile)
    grid_s = pl.cdiv(HW, spatial_tile)

    # v7x: make sure the 'parallel' grid has >= 2 steps so both TensorCores get
    # work (and DMA/compute pipelining exists at all). No-op on v5e/v6e (1 TC).
    if n_cores > 1 and grid_r * grid_s < n_cores:
        if spatial_tile > 128:
            spatial_tile = max(128, _round_up(pl.cdiv(spatial_tile, 2), 128))
        elif row_tile > row_align:
            row_tile = max(row_align, _round_up(pl.cdiv(row_tile, 2), row_align))
        grid_r = pl.cdiv(R, row_tile)
        grid_s = pl.cdiv(HW, spatial_tile)

    # Advisory cost hint: lets XLA schedule neighbors around a memory-bound op.
    cost = pl.CostEstimate(
        flops=2 * R * HW,
        transcendentals=0,
        bytes_accessed=2 * R * HW * itemsize + gb2.size * 4,
    )

    out2 = pl.pallas_call(
        film_kernel,
        out_shape=jax.ShapeDtypeStruct((R, HW), feats.dtype),
        grid=(grid_r, grid_s),
        in_specs=[
            pl.BlockSpec((row_tile, spatial_tile), lambda i, j: (i, j)),
            pl.BlockSpec((row_tile, 2), lambda i, j: (i, 0)),  # (gamma|beta), const over j
        ],
        out_specs=pl.BlockSpec((row_tile, spatial_tile), lambda i, j: (i, j)),
        compiler_params=pltpu.CompilerParams(
            dimension_semantics=("parallel", "parallel"),
            vmem_limit_bytes=vmem_limit),
        cost_estimate=cost,
    )(feats2, gb2)

    return out2.reshape(B, C, H, W)


if __name__ == "__main__":
    # Small, deterministic example shapes consistent with the module.
    B, C, H, W = 2, 4, 16, 16      # feats NCHW; feature_size == C
    D = 32                         # inp_dim
    F = C

    key = jax.random.PRNGKey(0)
    k1, k2, k3, k4 = jax.random.split(key, 4)
    feats = jax.random.normal(k1, (B, C, H, W), dtype=jnp.float32)
    inp = jax.random.normal(k2, (B, D), dtype=jnp.float32)
    # Deterministic Linear params: weight [D, 2F] (used as x @ w + b), bias [2F].
    w = jax.random.normal(k3, (D, 2 * F), dtype=jnp.float32) * 0.1
    b = jax.random.normal(k4, (2 * F,), dtype=jnp.float32) * 0.1

    # spatial_tile=128 forces a multi-step spatial grid even at this toy size so
    # the pipelined / tiled path is exercised; at production sizes the per-device
    # defaults pick 2-8 MiB tiles automatically.
    out = film_forward(feats, inp, w, b, F, spatial_tile=128)
    out = jax.block_until_ready(out)

    # Pure-JAX reference check.
    gb = inp @ w + b
    gamma = gb[:, :F].reshape(B, C, 1, 1)
    beta = gb[:, F:].reshape(B, C, 1, 1)
    ref = feats * gamma + beta
    assert out.shape == (B, C, H, W)
    assert jnp.allclose(out, ref, atol=1e-5, rtol=1e-5)

    print("KERNEL_OK")
</pallas_src>

<mosaic_0001>
module attributes {stable_mosaic.version = 11 : i64} {
  func.func @film_kernel(%arg0: i32, %arg1: i32, %arg2: memref<8x128xf32, #tpu.memory_space<vmem>>, %arg3: memref<8x2xf32, #tpu.memory_space<vmem>>, %arg4: memref<8x128xf32, #tpu.memory_space<vmem>>) attributes {dimension_semantics = [#tpu.dimension_semantics<parallel>, #tpu.dimension_semantics<parallel>], iteration_bounds = array<i64: 1, 2>, scalar_prefetch = 0 : i64, scratch_operands = 0 : i64, tpu.core_type = #tpu.core_type<tc>, window_params = [{transform_indices = @transform_0, window_bounds = array<i64: 8, 128>}, {transform_indices = @transform_1, window_bounds = array<i64: 8, 2>}, {transform_indices = @transform_2, window_bounds = array<i64: 8, 128>}]} {
    %c0 = arith.constant 0 : index
    %c0_0 = arith.constant 0 : index
    %0 = vector.load %arg3[%c0, %c0_0] : memref<8x2xf32, #tpu.memory_space<vmem>>, vector<8x2xf32>
    %1 = vector.extract_strided_slice %0 {offsets = [0, 0], sizes = [8, 1], strides = [1, 1]} : vector<8x2xf32> to vector<8x1xf32>
    %2 = vector.extract_strided_slice %0 {offsets = [0, 1], sizes = [8, 1], strides = [1, 1]} : vector<8x2xf32> to vector<8x1xf32>
    %c0_1 = arith.constant 0 : index
    %c0_2 = arith.constant 0 : index
    %3 = vector.load %arg2[%c0_1, %c0_2] : memref<8x128xf32, #tpu.memory_space<vmem>>, vector<8x128xf32>
    %4 = vector.broadcast %1 : vector<8x1xf32> to vector<8x128xf32>
    %5 = arith.mulf %3, %4 : vector<8x128xf32>
    %6 = vector.broadcast %2 : vector<8x1xf32> to vector<8x128xf32>
    %7 = arith.addf %5, %6 : vector<8x128xf32>
    %c0_3 = arith.constant 0 : index
    %c0_4 = arith.constant 0 : index
    %8 = vector.load %arg4[%c0_3, %c0_4] : memref<8x128xf32, #tpu.memory_space<vmem>>, vector<8x128xf32>
    tpu.vector_store %arg4[%c0_3, %c0_4], %7 {strides = array<i32>} : memref<8x128xf32, #tpu.memory_space<vmem>>, vector<8x128xf32>,
    return
  }
  func.func @transform_0(%arg0: i32, %arg1: i32) -> (i32, i32) {
    %c0_i32 = arith.constant 0 : i32
    return %arg0, %arg1 : i32, i32
  }
  func.func @transform_1(%arg0: i32, %arg1: i32) -> (i32, i32) {
    %c0_i32 = arith.constant 0 : i32
    %c0_i32_0 = arith.constant 0 : i32
    return %arg0, %c0_i32 : i32, i32
  }
  func.func @transform_2(%arg0: i32, %arg1: i32) -> (i32, i32) {
    %c0_i32 = arith.constant 0 : i32
    return %arg0, %arg1 : i32, i32
  }
}

</mosaic_0001>

<bundles_post_ra>
// kernel: tpu_custom_call.1
= control target key start
LH: loop header
LB: loop body
LE: loop exit
PB: predicated region body
PF: predicated region fallthrough
CT: control target
= control target key end

     0   :  { %7 = vsyncpa [#allocation3], 0  ;;  %s667_s0 = inlined_call_operand.hbm [shape: f32[8,256], index: 0, kind: input, shape index: {}]   ;;  %s668_s1 = inlined_call_operand.vmem [shape: f32[8,2], index: 1, kind: input, shape index: {}]   ;;  %s669_s2 = inlined_call_operand.hbm [shape: f32[8,256], index: 2, kind: output, shape index: {}]  }
   0x1   :  { %9 = vsyncpa [#allocation3 + $0x1], 0 }
   0x2   :  { %10 = vsyncpa [#allocation4], 0 }
   0x3   :  { %12 = vsyncpa [#allocation4 + $0x1], 0  ;;  %s530_s9 = smov 0   ;;  %s532_s10 = smov 0  }
   0x4   :  { %s534_s11 = smov 0   ;;  %s536_s12 = smov 0  }
   0x5   :  { %s538_s13 = smov 0   ;;  %s540_s14 = smov 0  }
   0x6 LB: > { %s321_s15 = sadd.s32 4294967295, %s509_s14   ;;  %s322_s16 = sadd.s32 4294967294, %s509_s14   ;;  %s509_s14 = sphi %s540_s14, %s18_s14   ;;  %s505_s13 = sphi %s538_s13, %s681_s13   ;;  %s501_s12 = sphi %s536_s12, %s680_s12   ;;  %s497_s11 = sphi %s534_s11, %s679_s11   ;;  %s493_s10 = sphi %s532_s10, %s678_s10   ;;  %s489_s9 = sphi %s530_s9, %s677_s9  }
   0x7   : > { %s27_s17 = sadd.s32 1, %s505_s13  ;;  %s39_s18 = sadd.s32 1, %s497_s11 }
   0x8   : > { %p28_p0 = scmp.ge.s32.totalorder %s27_s17, 2  ;;  %p46_p1 = scmp.ne.s32.totalorder %s497_s11, %s493_s10 }
   0x9   : > { %p47_p2 = scmp.eq.s32.totalorder %s509_s14, 0  ;;  %p52_p3 = scmp.ne.s32.totalorder %s493_s10, %s489_s9 }
   0xa   : > { %s683_s17 = smov (%p28_p0, %s27_s17), 0  ;;  %p53_p5 = scmp.eq.s32.totalorder %s321_s15, 0 }
   0xb   : > { %p571_p4 = por %p47_p2, %p46_p1  ;;  %s35_s20 = ssub.s32 %s505_s13, %s683_s17 }
   0xc   : > { %p104_p6 = scmp.eq.s32.totalorder %s321_s15, 1  ;;  %p37_p7 = scmp.eq.s32.totalorder %s35_s20, 0 }
   0xd   : > { %p577_p8 = por %p53_p5, %p52_p3  ;;  %p110_p10 = scmp.eq.s32.totalorder %s322_s16, 1 }
   0xe   : > { %p581_p9 = por %p104_p6, %p46_p1  ;;  %p347_p13 = scmp.lt.s32.totalorder %s509_s14, 2 }
   0xf   : > { %s586_s23 = scalar_select %p37_p7, %s497_s11, %s39_s18  }
  0x10   : > { %p588_p11 = por %p110_p10, %p52_p3  ;;  %s137_s25 = sand.u32 1, %s497_s11  }
  0x11   : > { %s326_s26 = sshll.u32 %s137_s25, 3  ;;  %s327_s27 = sshll.u32 %s505_s13, 7 }
  0x12   : > { %s673_s24 = scalar_select %p588_p11, 1, 0 }
  0x13   : > { %s148_s30 = scalar_lea.hbm %s667_s0, %s327_s27  ;;  %s141_s3 = scalar_lea.vmem [#allocation2], %s326_s26 }
  0x14   : > { %s150_s4 = sshll.u32 %s141_s3, 4  ;;  %p601_p0 = pnand %p347_p13, %p571_p4  ;;  %s151_s4 = int_to_ptr.vmem [resolvable:$true] %s150_s4 }
  0x15   : > { %p328_p1 = scmp.ge.s32.totalorder %s509_s14, 1  ;;  %p155_p2 = scmp.lt.s32.totalorder %s509_s14, 3 }
  0x16   : > { %s138_s6 = scalar_lea.sflag [#allocation3], %s137_s25  ;;  %p403_p3 = pneg %p601_p0 }
  0x17   : > { %s414_s7 = scalar_lea.vmem %s151_s4, 128  ;;  %s511_s8 = smov [#allocation2]  }
  0x18   : > { %p415_p5 = scmp.ne.s32.totalorder %s151_s4, %s414_s7  ;;  %s419_s15 = sshll.u32 %s511_s8, 4  ;;  %s420_s15 = int_to_ptr.vmem [resolvable:$false] %s419_s15 }
  0x19   : > { %s421_s16 = scalar_lea.vmem %s420_s15, 256  ;;  %p422_p10 = scmp.lt.s32.totalorder %s151_s4, %s420_s15 }
  0x1a   : > { %p417_p6 = pnand %p415_p5, %p403_p3  ;;  %p423_p12 = scmp.lt.s32.totalorder %s421_s16, %s414_s7 }
  0x1c   : > { %p418_p7 = pneg %p417_p6  ;;  %p424_p4 = por %p423_p12, %p422_p10 }
  0x1e   : > { %p425_p13 = pnand %p424_p4, %p418_p7 }
  0x20   : > { %428 = shalt.err (!%p425_p13)
}
  0x21   : > { %342 = dma.hbm_to_vmem [thread:$0]  (!%p601_p0), %s148_s30, 128, %s151_s4, %s138_s6  }
  0x22   : > { %p156_p11 = pnand %p328_p1, %p155_p2 }
  0x23   : > { %s616_s18 = sand.u32 (!%p156_p11), 1, %s493_s10  }
  0x24   : > { %159 = sbr.rel (%p156_p11) target bundleno = 188 (0xbc), region = 28  ;;  %s329_s19 = sshll.u32 (!%p156_p11), %s616_s18, 3 }
  0x25   : > { %s162_s20 = scalar_lea.sflag (!%p156_p11), [#allocation3], %s616_s18  ;;  %s165_s25 = scalar_lea.vmem (!%p156_p11), [#allocation2], %s329_s19 }
  0x29   : > { %480 = dma.done.wait (%p577_p8), %s162_s20, 128  }
  0x2a   : > { %482 = vsyncadd (%p577_p8), %s162_s20, 4294967168  ;;  %v512_v0 = vmov 0   ;;  %v194_v1 = vld [vmem:[%s668_s1] sm:$0xff]  ;;  %v513_v2 = vmov 1   ;;  %s332_s28 = sshll.u32 %s501_s12, 7  ;;  %s189_s29 = scalar_lea.vmem [#allocation5], %s329_s19 }
  0x2b   : > { %399 = vset.pattern.permute.xlu0 %v512_v0  ;;  %v195_v4 = vld [vmem:[%s165_s25] sm:$0xff]  ;;  %s224_s30 = sshll.u32 %s189_s29, 4  ;;  %s222_s4 = scalar_lea.hbm %s669_s2, %s332_s28  ;;  %s225_s30 = int_to_ptr.vmem [resolvable:$true] %s224_s30 }
  0x2c   : > { %198 = vperm.xlu0 %399, %v194_v1   ;;  %s209_s5 = scalar_lea.sflag [#allocation4], %s616_s18  ;;  %s429_s6 = scalar_lea.vmem %s225_s30, 128 }
  0x2d   : > { %p430_p8 = scmp.ne.s32.totalorder %s225_s30, %s429_s6  ;;  %s514_s7 = smov [#allocation5]  }
  0x2e   : > { %s433_s8 = sshll.u32 %s514_s7, 4  ;;  %s434_s8 = int_to_ptr.vmem [resolvable:$false] %s433_s8 }
  0x2f   : > { %p431_p11 = pnand %p430_p8, %p581_p9  ;;  %s435_s12 = scalar_lea.vmem %s434_s8, 256 }
  0x30   : > { %400 = vset.pattern.permute.xlu0 %v513_v2  ;;  %p436_p0 = scmp.lt.s32.totalorder %s225_s30, %s434_s8  ;;  %p437_p1 = scmp.lt.s32.totalorder %s435_s12, %s429_s6 }
  0x31   : > { %203 = vperm.xlu0 %400, %v194_v1   ;;  %p432_p12 = pneg %p431_p11 }
  0x32   : > { %p438_p2 = por %p437_p1, %p436_p0 }
  0x34   : > { %p439_p3 = pnand %p438_p2, %p432_p12 }
  0xa7   : > { %v199_v3 = vpop.permute.xlu0 %198 }
  0xa8   : > { %v201_v5 = vmul.f32 %v199_v3, %v195_v4 }
  0xac   : > { %v204_v6 = vpop.permute.xlu0 %203 }
  0xad   : > { %v206_v7 = vadd.f32 %v204_v6, %v201_v5 }
  0xaf   : > { %207 = vst [vmem:[%s189_s29] sm:$0xff] %v206_v7 }
  0xb0   : > { %442 = shalt.err (!%p439_p3)
}
  0xb1   : > { %s443_s15 = scalar_lea.hbm %s222_s4, 128  ;;  %s447_s19 = scalar_lea.hbm %s669_s2, 256 }
  0xb2   : > { %p444_p5 = scmp.ne.s32.totalorder %s222_s4, %s443_s15  ;;  %p448_p10 = scmp.lt.s32.totalorder %s222_s4, %s669_s2 }
  0xb3   : > { %p449_p4 = scmp.lt.s32.totalorder %s447_s19, %s443_s15 }
  0xb4   : > { %p445_p6 = pnand %p444_p5, %p581_p9 }
  0xb5   : > { %p450_p13 = por %p449_p4, %p448_p10 }
  0xb6   : > { %p446_p7 = pneg %p445_p6 }
  0xb8   : > { %p451_p8 = pnand %p450_p13, %p446_p7 }
  0xba   : > { %454 = shalt.err (!%p451_p8)
}
  0xbb   : > { %337 = dma.vmem_to_hbm [thread:$0]  (%p581_p9), %s225_s30, 128, %s222_s4, %s209_s5  }
  0xbc PF: > { %s236_s26 = sand.u32 1, %s489_s9   ;;  %p675_p11 = scmp.ne.s32.totalorder %s673_s24, 0 }
  0xbd   : > { %p676_p12 = scmp.ge.s32.totalorder %s509_s14, 2  ;;  %s237_s27 = scalar_lea.sflag [#allocation4], %s236_s26 }
  0xbf   : > { %p344_p0 = pnand %p676_p12, %p675_p11 }
  0xc1   : > { %p345_p1 = pneg %p344_p0 }
  0xc3   : > { %484 = dma.done.wait (%p345_p1), %s237_s27, 128  }
  0xc4   : > { %486 = vsyncadd (%p345_p1), %s237_s27, 4294967168  ;;  %s18_s14 = sadd.s32 1, %s509_s14   ;;  %s677_s9 = smov %s493_s10 }
  0xc5   : > { %p15_p2 = scmp.ge.s32.totalorder %s18_s14, 4   ;;  %s678_s10 = smov %s497_s11 }
  0xc6   : > { %s679_s11 = smov %s586_s23  ;;  %s680_s12 = smov %s505_s13 }
  0xc7   : > { %s681_s13 = smov %s683_s17  ;;  %17 = sbr.rel (!%p15_p2) target bundleno = 6 (0x6), region = 76 }
  0xcc   :  { %242 = vsyncpa [#allocation3], 1 }
  0xcd   :  { %244 = vsyncpa [#allocation3 + $0x1], 1 }
  0xce   :  { %245 = vsyncpa [#allocation4], 1 }
  0xcf   :  { %247 = vsyncpa [#allocation4 + $0x1], 1 }

</bundles_post_ra>
